<compile_context>
chip_gen: v7x
topology: tpu7x:2x2x1
jax: 0.10.0
libtpu: 0.0.40
codegen_flags: <defaults>
</compile_context>

<pallas_src>
import functools

import jax
import jax.numpy as jnp
from jax.experimental import pallas as pl
from jax.experimental.pallas import tpu as pltpu

LANE = 128
SUBLANE = 8


def _round_up(n, m):
    return ((n + m - 1) // m) * m


# ---------------------------------------------------------------------------
# Kernel
# ---------------------------------------------------------------------------
def encoder_kernel(x_ref, w1_ref, wstack_ref, bstack_ref, out_ref):
    """One batch tile of the 6-layer MLP.

    x_ref:      (TB, x_dim)   f32
    w1_ref:     (x_dim, P)    bf16   fc1 weight, transposed, lane-padded
    wstack_ref: (L-1, P, P)   bf16   fc2..fcL weights, stacked
    bstack_ref: (L, 1, P)     f32    all biases, stacked
    out_ref:    (TB, P)       f32    lane-dense output tile

    Activations are carried in f32; operands are cast to bf16 immediately
    before each MXU matmul; accumulation is f32 (preferred_element_type).
    """
    # fc1 + ReLU
    h = jnp.dot(x_ref[...].astype(jnp.bfloat16), w1_ref[...],
                preferred_element_type=jnp.float32)
    h = jnp.maximum(h + bstack_ref[0], 0.0)

    # fc2..fcL (ReLU on all but the last), statically unrolled
    n_stacked = wstack_ref.shape[0]
    for l in range(n_stacked):
        h = jnp.dot(h.astype(jnp.bfloat16), wstack_ref[l],
                    preferred_element_type=jnp.float32)
        h = h + bstack_ref[l + 1]
        if l < n_stacked - 1:
            h = jnp.maximum(h, 0.0)

    out_ref[...] = jax.nn.sigmoid(h).astype(out_ref.dtype)


# ---------------------------------------------------------------------------
# One-time parameter packing (off the hot path)
# ---------------------------------------------------------------------------
def prepare_params(params):
    """Pack PyTorch-convention params (list of (W(out,in), b(out))).

    Returns (w1, wstack, bstack, out_dim):
      w1     : (x_dim, P) bf16   fc1 weight transposed, output lane-padded
      wstack : (L-1, P, P) bf16  fc2..fcL weights transposed, zero-padded
      bstack : (L, 1, P) f32     all biases, zero-padded
      out_dim: int               true output width of the last layer

    Zero padding is exact for the forward pass: padded bias entries are 0 and
    padded weight rows/cols are 0, so padded activation lanes stay 0 through
    every layer; the final padded lanes are sliced away in the wrapper.
    """
    Ws = [jnp.asarray(W, jnp.float32) for W, _ in params]
    bs = [jnp.asarray(b, jnp.float32) for _, b in params]
    out_dims = [int(W.shape[0]) for W in Ws]
    in_dims = [int(W.shape[1]) for W in Ws]
    x_dim = in_dims[0]
    # Uniform hidden padding so layers 2..L stack into one tensor.
    P = _round_up(max(out_dims + in_dims[1:]), LANE)

    w1 = jnp.zeros((x_dim, P), jnp.float32)
    w1 = w1.at[:, :out_dims[0]].set(Ws[0].T).astype(jnp.bfloat16)

    wstack = jnp.zeros((len(Ws) - 1, P, P), jnp.float32)
    for l in range(1, len(Ws)):
        wstack = wstack.at[l - 1, :in_dims[l], :out_dims[l]].set(Ws[l].T)
    wstack = wstack.astype(jnp.bfloat16)

    bstack = jnp.zeros((len(bs), 1, P), jnp.float32)
    for l in range(len(bs)):
        bstack = bstack.at[l, 0, :out_dims[l]].set(bs[l])

    return w1, wstack, bstack, out_dims[-1]


# ---------------------------------------------------------------------------
# Forward
# ---------------------------------------------------------------------------
def _choose_batch_tiling(B, batch_tile):
    """Pick (TB, Bp): minimal sublane padding, >=2 grid steps when possible."""
    B8 = _round_up(B, SUBLANE)
    if B8 < 2 * SUBLANE:
        return B8, B8                              # single tiny tile (B=8 case)
    if B8 <= 2 * batch_tile:
        TB = _round_up((B8 + 1) // 2, SUBLANE)     # 2 steps -> megacore on v7x
        return TB, 2 * TB
    return batch_tile, _round_up(B, batch_tile)    # MXU-row-matched tiles


@functools.partial(jax.jit, static_argnames=("out_dim", "batch_tile"))
def _encoder_forward_jit(x, w1, wstack, bstack, *, out_dim, batch_tile=256):
    B, x_dim = x.shape
    P = bstack.shape[-1]
    TB, Bp = _choose_batch_tiling(B, batch_tile)

    # Only pad the batch (sublane) axis, and only when actually needed.
    xp = x if Bp == B else jnp.zeros((Bp, x_dim), x.dtype).at[:B].set(x)

    out_padded = pl.pallas_call(
        encoder_kernel,
        out_shape=jax.ShapeDtypeStruct((Bp, P), jnp.float32),
        grid=(Bp // TB,),
        in_specs=[
            # x: tiled over the batch; last dim == full array dim (legal < 128)
            pl.BlockSpec((TB, x_dim), lambda i: (i, 0)),
            # weights/biases: constant index_map -> DMA'd once, VMEM-resident
            pl.BlockSpec(w1.shape, lambda i: (0, 0)),
            pl.BlockSpec(wstack.shape, lambda i: (0, 0, 0)),
            pl.BlockSpec(bstack.shape, lambda i: (0, 0, 0)),
        ],
        out_specs=pl.BlockSpec((TB, P), lambda i: (i, 0)),
        compiler_params=pltpu.CompilerParams(
            dimension_semantics=("parallel",)),     # batch shards over 2 TCs on v7x
    )(xp, w1, wstack, bstack)

    # Slice back to the true (B, out_dim) inside the same jit.
    return out_padded[:B, :out_dim]


def encoder_forward(x, w1, wstack, bstack, out_dim, *, batch_tile=256):
    """x: (B, x_dim) f32; packed params from prepare_params()."""
    return _encoder_forward_jit(x, w1, wstack, bstack,
                                out_dim=out_dim, batch_tile=batch_tile)


# ---------------------------------------------------------------------------
# Init + references
# ---------------------------------------------------------------------------
def init_linear(key, in_dim, out_dim):
    """Deterministic init mimicking nn.Linear's uniform(-1/sqrt(in), 1/sqrt(in))."""
    kw, kb = jax.random.split(key)
    bound = 1.0 / (in_dim ** 0.5)
    W = jax.random.uniform(kw, (out_dim, in_dim), jnp.float32, -bound, bound)
    b = jax.random.uniform(kb, (out_dim,), jnp.float32, -bound, bound)
    return W, b


def reference_forward_f32(x, params):
    """Pure-JAX f32 reference matching the PyTorch forward (h_dim6 > 0 branch)."""
    h = x
    for i, (W, b) in enumerate(params):
        h = h @ W.T + b
        if i < len(params) - 1:
            h = jnp.maximum(h, 0.0)
    return jax.nn.sigmoid(h)


def reference_forward_bf16(x, params):
    """Reference matching the kernel's bf16-operand / f32-accumulate matmuls."""
    h = x
    for i, (W, b) in enumerate(params):
        hb = h.astype(jnp.bfloat16).astype(jnp.float32)
        Wb = W.astype(jnp.bfloat16).astype(jnp.float32)
        h = hb @ Wb.T + b
        if i < len(params) - 1:
            h = jnp.maximum(h, 0.0)
    return jax.nn.sigmoid(h)


# ---------------------------------------------------------------------------
if __name__ == "__main__":
    # Small shapes consistent with the module (all h_dims > 0 -> full 6-layer path).
    batch = 8
    x_dim, h1, h2, h3, h4, h5, h6 = 32, 64, 48, 40, 32, 24, 16

    key = jax.random.PRNGKey(0)
    keys = jax.random.split(key, 8)

    layer_dims = [(x_dim, h1), (h1, h2), (h2, h3), (h3, h4), (h4, h5), (h5, h6)]
    params = [init_linear(keys[i], d_in, d_out)
              for i, (d_in, d_out) in enumerate(layer_dims)]

    # One-time parameter packing (transpose + lane-pad + stack + bf16).
    w1, wstack, bstack, out_dim = prepare_params(params)

    x = jax.random.normal(keys[7], (batch, x_dim), jnp.float32)

    out = encoder_forward(x, w1, wstack, bstack, out_dim)
    out = jax.block_until_ready(out)

    assert out.shape == (batch, h6)
    # Tight check vs. a reference using the same bf16-rounded operands.
    ref_bf16 = reference_forward_bf16(x, params)
    assert jnp.allclose(out, ref_bf16, atol=1e-4, rtol=1e-4), \
        "mismatch vs bf16-matched reference"
    # Loose sanity check vs. the pure-f32 reference (bf16 quantization noise only).
    ref_f32 = reference_forward_f32(x, params)
    assert jnp.allclose(out, ref_f32, atol=5e-2, rtol=5e-2), \
        "mismatch vs f32 reference"

    print("KERNEL_OK")
</pallas_src>

<mosaic_0001>
module attributes {stable_mosaic.version = 11 : i64} {
  func.func @encoder_kernel(%arg0: i32, %arg1: memref<8x32xf32, #tpu.memory_space<vmem>>, %arg2: memref<32x128xbf16, #tpu.memory_space<vmem>>, %arg3: memref<5x128x128xbf16, #tpu.memory_space<vmem>>, %arg4: memref<6x1x128xf32, #tpu.memory_space<vmem>>, %arg5: memref<8x128xf32, #tpu.memory_space<vmem>>) attributes {dimension_semantics = [#tpu.dimension_semantics<parallel>], iteration_bounds = array<i64: 1>, scalar_prefetch = 0 : i64, scratch_operands = 0 : i64, tpu.core_type = #tpu.core_type<tc>, window_params = [{transform_indices = @transform_0, window_bounds = array<i64: 8, 32>}, {pipeline_mode = #tpu.pipeline_mode<synchronous>, transform_indices = @transform_1, window_bounds = array<i64: 32, 128>}, {pipeline_mode = #tpu.pipeline_mode<synchronous>, transform_indices = @transform_2, window_bounds = array<i64: 5, 128, 128>}, {pipeline_mode = #tpu.pipeline_mode<synchronous>, transform_indices = @transform_3, window_bounds = array<i64: 6, 1, 128>}, {transform_indices = @transform_4, window_bounds = array<i64: 8, 128>}]} {
    %c0 = arith.constant 0 : index
    %c0_0 = arith.constant 0 : index
    %0 = vector.load %arg1[%c0, %c0_0] : memref<8x32xf32, #tpu.memory_space<vmem>>, vector<8x32xf32>
    %1 = arith.truncf %0 : vector<8x32xf32> to vector<8x32xbf16>
    %c0_1 = arith.constant 0 : index
    %c0_2 = arith.constant 0 : index
    %2 = vector.load %arg2[%c0_1, %c0_2] : memref<32x128xbf16, #tpu.memory_space<vmem>>, vector<32x128xbf16>
    %cst = arith.constant dense<0.000000e+00> : vector<8x128xf32>
    %3 = tpu.matmul %1, %2, %cst {dimension_numbers = #tpu.dot_dimension_numbers<[1], [0], [0], [1], [0, 0, 1, 1], [], []>} : vector<8x32xbf16>, vector<32x128xbf16>, vector<8x128xf32> -> vector<8x128xf32>
    %c0_3 = arith.constant 0 : index
    %c0_4 = arith.constant 0 : index
    %c0_5 = arith.constant 0 : index
    %4 = vector.load %arg4[%c0_3, %c0_4, %c0_5] : memref<6x1x128xf32, #tpu.memory_space<vmem>>, vector<1x1x128xf32>
    %5 = vector.shape_cast %4 : vector<1x1x128xf32> to vector<1x128xf32>
    %6 = vector.broadcast %5 : vector<1x128xf32> to vector<8x128xf32>
    %7 = arith.addf %3, %6 : vector<8x128xf32>
    %cst_6 = arith.constant 0.000000e+00 : f32
    %8 = vector.broadcast %cst_6 : f32 to vector<8x128xf32>
    %9 = arith.maximumf %7, %8 : vector<8x128xf32>
    %10 = arith.truncf %9 : vector<8x128xf32> to vector<8x128xbf16>
    %c0_7 = arith.constant 0 : index
    %c0_8 = arith.constant 0 : index
    %c0_9 = arith.constant 0 : index
    %11 = vector.load %arg3[%c0_7, %c0_8, %c0_9] : memref<5x128x128xbf16, #tpu.memory_space<vmem>>, vector<1x128x128xbf16>
    %12 = vector.shape_cast %11 : vector<1x128x128xbf16> to vector<128x128xbf16>
    %cst_10 = arith.constant dense<0.000000e+00> : vector<8x128xf32>
    %13 = tpu.matmul %10, %12, %cst_10 {dimension_numbers = #tpu.dot_dimension_numbers<[1], [0], [0], [1], [0, 0, 1, 1], [], []>} : vector<8x128xbf16>, vector<128x128xbf16>, vector<8x128xf32> -> vector<8x128xf32>
    %c1 = arith.constant 1 : index
    %c0_11 = arith.constant 0 : index
    %c0_12 = arith.constant 0 : index
    %14 = vector.load %arg4[%c1, %c0_11, %c0_12] : memref<6x1x128xf32, #tpu.memory_space<vmem>>, vector<1x1x128xf32>
    %15 = vector.shape_cast %14 : vector<1x1x128xf32> to vector<1x128xf32>
    %16 = vector.broadcast %15 : vector<1x128xf32> to vector<8x128xf32>
    %17 = arith.addf %13, %16 : vector<8x128xf32>
    %cst_13 = arith.constant 0.000000e+00 : f32
    %18 = vector.broadcast %cst_13 : f32 to vector<8x128xf32>
    %19 = arith.maximumf %17, %18 : vector<8x128xf32>
    %20 = arith.truncf %19 : vector<8x128xf32> to vector<8x128xbf16>
    %c1_14 = arith.constant 1 : index
    %c0_15 = arith.constant 0 : index
    %c0_16 = arith.constant 0 : index
    %21 = vector.load %arg3[%c1_14, %c0_15, %c0_16] : memref<5x128x128xbf16, #tpu.memory_space<vmem>>, vector<1x128x128xbf16>
    %22 = vector.shape_cast %21 : vector<1x128x128xbf16> to vector<128x128xbf16>
    %cst_17 = arith.constant dense<0.000000e+00> : vector<8x128xf32>
    %23 = tpu.matmul %20, %22, %cst_17 {dimension_numbers = #tpu.dot_dimension_numbers<[1], [0], [0], [1], [0, 0, 1, 1], [], []>} : vector<8x128xbf16>, vector<128x128xbf16>, vector<8x128xf32> -> vector<8x128xf32>
    %c2 = arith.constant 2 : index
    %c0_18 = arith.constant 0 : index
    %c0_19 = arith.constant 0 : index
    %24 = vector.load %arg4[%c2, %c0_18, %c0_19] : memref<6x1x128xf32, #tpu.memory_space<vmem>>, vector<1x1x128xf32>
    %25 = vector.shape_cast %24 : vector<1x1x128xf32> to vector<1x128xf32>
    %26 = vector.broadcast %25 : vector<1x128xf32> to vector<8x128xf32>
    %27 = arith.addf %23, %26 : vector<8x128xf32>
    %cst_20 = arith.constant 0.000000e+00 : f32
    %28 = vector.broadcast %cst_20 : f32 to vector<8x128xf32>
    %29 = arith.maximumf %27, %28 : vector<8x128xf32>
    %30 = arith.truncf %29 : vector<8x128xf32> to vector<8x128xbf16>
    %c2_21 = arith.constant 2 : index
    %c0_22 = arith.constant 0 : index
    %c0_23 = arith.constant 0 : index
    %31 = vector.load %arg3[%c2_21, %c0_22, %c0_23] : memref<5x128x128xbf16, #tpu.memory_space<vmem>>, vector<1x128x128xbf16>
    %32 = vector.shape_cast %31 : vector<1x128x128xbf16> to vector<128x128xbf16>
    %cst_24 = arith.constant dense<0.000000e+00> : vector<8x128xf32>
    %33 = tpu.matmul %30, %32, %cst_24 {dimension_numbers = #tpu.dot_dimension_numbers<[1], [0], [0], [1], [0, 0, 1, 1], [], []>} : vector<8x128xbf16>, vector<128x128xbf16>, vector<8x128xf32> -> vector<8x128xf32>
    %c3 = arith.constant 3 : index
    %c0_25 = arith.constant 0 : index
    %c0_26 = arith.constant 0 : index
    %34 = vector.load %arg4[%c3, %c0_25, %c0_26] : memref<6x1x128xf32, #tpu.memory_space<vmem>>, vector<1x1x128xf32>
    %35 = vector.shape_cast %34 : vector<1x1x128xf32> to vector<1x128xf32>
    %36 = vector.broadcast %35 : vector<1x128xf32> to vector<8x128xf32>
    %37 = arith.addf %33, %36 : vector<8x128xf32>
    %cst_27 = arith.constant 0.000000e+00 : f32
    %38 = vector.broadcast %cst_27 : f32 to vector<8x128xf32>
    %39 = arith.maximumf %37, %38 : vector<8x128xf32>
    %40 = arith.truncf %39 : vector<8x128xf32> to vector<8x128xbf16>
    %c3_28 = arith.constant 3 : index
    %c0_29 = arith.constant 0 : index
    %c0_30 = arith.constant 0 : index
    %41 = vector.load %arg3[%c3_28, %c0_29, %c0_30] : memref<5x128x128xbf16, #tpu.memory_space<vmem>>, vector<1x128x128xbf16>
    %42 = vector.shape_cast %41 : vector<1x128x128xbf16> to vector<128x128xbf16>
    %cst_31 = arith.constant dense<0.000000e+00> : vector<8x128xf32>
    %43 = tpu.matmul %40, %42, %cst_31 {dimension_numbers = #tpu.dot_dimension_numbers<[1], [0], [0], [1], [0, 0, 1, 1], [], []>} : vector<8x128xbf16>, vector<128x128xbf16>, vector<8x128xf32> -> vector<8x128xf32>
    %c4 = arith.constant 4 : index
    %c0_32 = arith.constant 0 : index
    %c0_33 = arith.constant 0 : index
    %44 = vector.load %arg4[%c4, %c0_32, %c0_33] : memref<6x1x128xf32, #tpu.memory_space<vmem>>, vector<1x1x128xf32>
    %45 = vector.shape_cast %44 : vector<1x1x128xf32> to vector<1x128xf32>
    %46 = vector.broadcast %45 : vector<1x128xf32> to vector<8x128xf32>
    %47 = arith.addf %43, %46 : vector<8x128xf32>
    %cst_34 = arith.constant 0.000000e+00 : f32
    %48 = vector.broadcast %cst_34 : f32 to vector<8x128xf32>
    %49 = arith.maximumf %47, %48 : vector<8x128xf32>
    %50 = arith.truncf %49 : vector<8x128xf32> to vector<8x128xbf16>
    %c4_35 = arith.constant 4 : index
    %c0_36 = arith.constant 0 : index
    %c0_37 = arith.constant 0 : index
    %51 = vector.load %arg3[%c4_35, %c0_36, %c0_37] : memref<5x128x128xbf16, #tpu.memory_space<vmem>>, vector<1x128x128xbf16>
    %52 = vector.shape_cast %51 : vector<1x128x128xbf16> to vector<128x128xbf16>
    %cst_38 = arith.constant dense<0.000000e+00> : vector<8x128xf32>
    %53 = tpu.matmul %50, %52, %cst_38 {dimension_numbers = #tpu.dot_dimension_numbers<[1], [0], [0], [1], [0, 0, 1, 1], [], []>} : vector<8x128xbf16>, vector<128x128xbf16>, vector<8x128xf32> -> vector<8x128xf32>
    %c5 = arith.constant 5 : index
    %c0_39 = arith.constant 0 : index
    %c0_40 = arith.constant 0 : index
    %54 = vector.load %arg4[%c5, %c0_39, %c0_40] : memref<6x1x128xf32, #tpu.memory_space<vmem>>, vector<1x1x128xf32>
    %55 = vector.shape_cast %54 : vector<1x1x128xf32> to vector<1x128xf32>
    %56 = vector.broadcast %55 : vector<1x128xf32> to vector<8x128xf32>
    %57 = arith.addf %53, %56 : vector<8x128xf32>
    %58 = arith.negf %57 : vector<8x128xf32>
    %59 = math.exp %58 : vector<8x128xf32>
    %cst_41 = arith.constant 1.000000e+00 : f32
    %60 = vector.broadcast %cst_41 : f32 to vector<8x128xf32>
    %61 = arith.addf %60, %59 : vector<8x128xf32>
    %62 = arith.divf %60, %61 : vector<8x128xf32>
    %c0_42 = arith.constant 0 : index
    %c0_43 = arith.constant 0 : index
    %63 = vector.load %arg5[%c0_42, %c0_43] : memref<8x128xf32, #tpu.memory_space<vmem>>, vector<8x128xf32>
    tpu.vector_store %arg5[%c0_42, %c0_43], %62 {strides = array<i32>} : memref<8x128xf32, #tpu.memory_space<vmem>>, vector<8x128xf32>,
    return
  }
  func.func @transform_0(%arg0: i32) -> (i32, i32) {
    %c0_i32 = arith.constant 0 : i32
    %c0_i32_0 = arith.constant 0 : i32
    return %arg0, %c0_i32 : i32, i32
  }
  func.func @transform_1(%arg0: i32) -> (i32, i32) {
    %c0_i32 = arith.constant 0 : i32
    %c0_i32_0 = arith.constant 0 : i32
    %c0_i32_1 = arith.constant 0 : i32
    return %c0_i32, %c0_i32_0 : i32, i32
  }
  func.func @transform_2(%arg0: i32) -> (i32, i32, i32) {
    %c0_i32 = arith.constant 0 : i32
    %c0_i32_0 = arith.constant 0 : i32
    %c0_i32_1 = arith.constant 0 : i32
    %c0_i32_2 = arith.constant 0 : i32
    return %c0_i32, %c0_i32_0, %c0_i32_1 : i32, i32, i32
  }
  func.func @transform_3(%arg0: i32) -> (i32, i32, i32) {
    %c0_i32 = arith.constant 0 : i32
    %c0_i32_0 = arith.constant 0 : i32
    %c0_i32_1 = arith.constant 0 : i32
    %c0_i32_2 = arith.constant 0 : i32
    return %c0_i32, %c0_i32_0, %c0_i32_1 : i32, i32, i32
  }
  func.func @transform_4(%arg0: i32) -> (i32, i32) {
    %c0_i32 = arith.constant 0 : i32
    %c0_i32_0 = arith.constant 0 : i32
    return %arg0, %c0_i32 : i32, i32
  }
}

</mosaic_0001>

<bundles_post_ra>
// kernel: _encoder_forward_jit.1
= control target key start
LH: loop header
LB: loop body
LE: loop exit
PB: predicated region body
PF: predicated region fallthrough
CT: control target
= control target key end

     0   :  { %9 = vsyncpa [#allocation3], 0  ;;  %s1242_s0 = inlined_call_operand.hbm [shape: f32[8,32], index: 0, kind: input, shape index: {}]   ;;  %s1243_s1 = inlined_call_operand.hbm [shape: bf16[32,128], index: 1, kind: input, shape index: {}]   ;;  %s1244_s2 = inlined_call_operand.hbm [shape: bf16[5,128,128], index: 2, kind: input, shape index: {}]   ;;  %s1245_s3 = inlined_call_operand.vmem [shape: f32[6,1,128], index: 3, kind: input, shape index: {}]   ;;  %s1246_s4 = inlined_call_operand.hbm [shape: f32[8,128], index: 4, kind: output, shape index: {}]  }
   0x1   :  { %10 = vsyncpa [#allocation6], 0 }
   0x2   :  { %11 = vsyncpa [#allocation4], 0  ;;  %s1083_s15 = smov [#allocation5]   ;;  %s989_s19 = scalar_lea.hbm %s1243_s1, 256 }
   0x3   :  { %s27_s16 = sshll.u32 %s1083_s15, 4  ;;  %p990_p0 = scmp.ne.s32.totalorder %s1243_s1, %s989_s19  ;;  %s28_s16 = int_to_ptr.vmem [resolvable:$true] %s27_s16 }
   0x4   :  { %p993_p1 = scmp.lt.u32.totalorder %s989_s19, %s1243_s1 }
   0x6   :  { %p995_p2 = pnand %p993_p1, %p990_p0 }
   0x8   :  { %998 = shalt.err (!%p995_p2)
}
   0x9   :  { %s999_s24 = scalar_lea.vmem %s28_s16, 256  ;;  %p1004_p4 = scmp.lt.s32.totalorder %s28_s16, %s28_s16 }
   0xa   :  { %p1000_p3 = scmp.ne.s32.totalorder %s28_s16, %s999_s24  ;;  %p1005_p5 = scmp.lt.s32.totalorder %s999_s24, %s999_s24 }
   0xc   :  { %p1006_p6 = por %p1005_p5, %p1004_p4 }
   0xe   :  { %p1007_p7 = pnand %p1006_p6, %p1000_p3 }
  0x10   :  { %1010 = shalt.err (!%p1007_p7)
}
  0x11   :  { %s1084_s25 = smov 64   ;;  %s1085_s26 = smov 4  }
  0x12   :  { %33 = dma.hbm_to_vmem [thread:$0]  %s1243_s1, 256, %s28_s16, [#allocation6], %s1084_s25, %s1084_s25, %s1085_s26  }
  0x13   :  { %s1086_s29 = smov [#allocation2]   ;;  %s1087_s5 = smov [#allocation7]  }
  0x14   :  { %s18_s30 = sshll.u32 %s1086_s29, 4  ;;  %s39_s6 = sshll.u32 %s1087_s5, 4  ;;  %s19_s30 = int_to_ptr.vmem [resolvable:$true] %s18_s30  ;;  %s40_s6 = int_to_ptr.vmem [resolvable:$true] %s39_s6 }
  0x15   :  { %s1011_s9 = scalar_lea.hbm %s1242_s0, 128 }
  0x16   :  { %p1012_p8 = scmp.ne.s32.totalorder %s1242_s0, %s1011_s9  ;;  %p1015_p9 = scmp.lt.u32.totalorder %s1011_s9, %s1242_s0 }
  0x18   :  { %p1017_p10 = pnand %p1015_p9, %p1012_p8 }
  0x1a   :  { %1020 = shalt.err (!%p1017_p10)
}
  0x1b   :  { %s1021_s1 = scalar_lea.vmem %s19_s30, 128  ;;  %p1026_p12 = scmp.lt.s32.totalorder %s19_s30, %s19_s30 }
  0x1c   :  { %p1022_p11 = scmp.ne.s32.totalorder %s19_s30, %s1021_s1  ;;  %p1027_p13 = scmp.lt.s32.totalorder %s1021_s1, %s1021_s1 }
  0x1e   :  { %p1028_p0 = por %p1027_p13, %p1026_p12 }
  0x20   :  { %p1029_p1 = pnand %p1028_p0, %p1022_p11 }
  0x22   :  { %1032 = shalt.err (!%p1029_p1)
}
  0x23   :  { %21 = dma.hbm_to_vmem [thread:$0]  %s1242_s0, 128, %s19_s30, [#allocation3]  }
  0x24   :  { %s1033_s18 = scalar_lea.hbm %s1244_s2, 5120 }
  0x25   :  { %p1034_p2 = scmp.ne.s32.totalorder %s1244_s2, %s1033_s18  ;;  %p1037_p3 = scmp.lt.u32.totalorder %s1033_s18, %s1244_s2 }
  0x27   :  { %p1039_p4 = pnand %p1037_p3, %p1034_p2 }
  0x29   :  { %1042 = shalt.err (!%p1039_p4)
}
  0x2a   :  { %s1043_s23 = scalar_lea.vmem %s40_s6, 5120  ;;  %p1048_p6 = scmp.lt.s32.totalorder %s40_s6, %s40_s6 }
  0x2b   :  { %p1044_p5 = scmp.ne.s32.totalorder %s40_s6, %s1043_s23  ;;  %p1049_p7 = scmp.lt.s32.totalorder %s1043_s23, %s1043_s23 }
  0x2d   :  { %p1050_p8 = por %p1049_p7, %p1048_p6 }
  0x2f   :  { %p1051_p9 = pnand %p1050_p8, %p1044_p5 }
  0x31   :  { %1054 = shalt.err (!%p1051_p9)
}
  0x32   :  { %45 = dma.hbm_to_vmem [thread:$0]  %s1244_s2, 5120, %s40_s6, [#allocation6], %s1084_s25, %s1084_s25, %s1085_s26  }
  0x33   :  { %1077 = dma.done.wait [#allocation3], 128  }
  0x34   :  { %1078 = vsyncadd [#allocation3], 4294967168 }
  0x35   :  { %1079 = dma.done.wait [#allocation6], 5376  }
  0x36   :  { %1080 = vsyncadd [#allocation6], 4294961920  ;;  %v1088_v0 = vmov 0.0   ;;  %vm1089_vm0 = vmmov 0   ;;  %v943_v1 = vld [vmem:[#allocation5] sm:$0xff]   ;;  %v944_v2 = vld [vmem:[#allocation5 + $0x8] sm:$0xff]  }
  0x37   :  { %827 = vmatprep.subr.bf16.mxu0 %v1088_v0  ;;  %831 = vmatprep.mubr.msk.bf16.mxu0 %vm1089_vm0, %v1088_v0  ;;  %v58_v3 = vld [vmem:[#allocation2] sm:$0xff]  ;;  %v945_v4 = vld [vmem:[#allocation7] sm:$0xff]   ;;  %vm83_vm1 = vcmask 261120   ;;  %v947_v7 = vld [vmem:[#allocation7 + $0x10] sm:$0xff]   ;;  %s1090_s10 = smov [#allocation8]  }
  0x38   :  { %835 = vmatprep.subr.bf16.mxu1 %v1088_v0  ;;  %851 = vmatprep.mubr.msk.bf16.mxu1 %vm1089_vm0, %v1088_v0  ;;  %v59_v5 = vpack.c.bf16 %v58_v3, %v58_v3  ;;  %v946_v6 = vld [vmem:[#allocation7 + $0x8] sm:$0xff]   ;;  %v948_v8 = vld [vmem:[#allocation7 + $0x18] sm:$0xff]   ;;  %v949_v9 = vld [vmem:[#allocation7 + $0x20] sm:$0xff]   ;;  %s714_s11 = sshll.u32 %s1090_s10, 4  ;;  %s715_s11 = int_to_ptr.vmem [resolvable:$true] %s714_s11 }
  0x39   :  { %828 = vmatpush3.bf16.msra.mxu0 %v943_v1  ;;  %836 = vmatpush3.bf16.msra.mxu1 %v945_v4  ;;  %v950_v10 = vld [vmem:[#allocation7 + $0x28] sm:$0xff]   ;;  %v951_v11 = vld [vmem:[#allocation7 + $0x30] sm:$0xff]   ;;  %v952_v12 = vld [vmem:[#allocation7 + $0x38] sm:$0xff]   ;;  %s1055_s12 = scalar_lea.vmem %s715_s11, 128  ;;  %p1060_p11 = scmp.lt.s32.totalorder %s715_s11, %s715_s11 }
  0x3a   :  { %829 = vmatprep.subr.bf16.mxu0 %v1088_v0  ;;  %837 = vmatprep.subr.bf16.mxu1 %v1088_v0  ;;  %v953_v13 = vld [vmem:[#allocation7 + $0x40] sm:$0xff]   ;;  %v954_v14 = vld [vmem:[#allocation7 + $0x48] sm:$0xff]   ;;  %v955_v15 = vld [vmem:[#allocation7 + $0x50] sm:$0xff]   ;;  %p1056_p10 = scmp.ne.s32.totalorder %s715_s11, %s1055_s12  ;;  %p1061_p12 = scmp.lt.s32.totalorder %s1055_s12, %s1055_s12 }
  0x3b   :  { %v956_v16 = vld [vmem:[#allocation7 + $0x58] sm:$0xff]   ;;  %v957_v17 = vld [vmem:[#allocation7 + $0x60] sm:$0xff]   ;;  %v958_v18 = vld [vmem:[#allocation7 + $0x68] sm:$0xff]  }
  0x3c   :  { %v724_v19 = vld [vmem:[%s1245_s3] ss:$0 sm:$0xff]  ;;  %v959_v27 = vld [vmem:[#allocation7 + $0x70] sm:$0xff]   ;;  %v960_v28 = vld [vmem:[#allocation7 + $0x78] sm:$0xff]   ;;  %p1062_p13 = por %p1061_p12, %p1060_p11 }
  0x3d   :  { %830 = vmatpush3.bf16.msra.mxu0 %v944_v2  ;;  %838 = vmatpush3.bf16.msra.mxu1 %v946_v6  ;;  %v961_v29 = vld [vmem:[#allocation7 + $0x80] sm:$0xff]   ;;  %v962_v30 = vld [vmem:[#allocation7 + $0x88] sm:$0xff]   ;;  %v963_v31 = vld [vmem:[#allocation7 + $0x90] sm:$0xff]  }
  0x3e   :  { %855 = vmatprep.subr.bf16.mxu0 %v1088_v0  ;;  %839 = vmatprep.subr.bf16.mxu1 %v1088_v0  ;;  %v964_v32 = vld [vmem:[#allocation7 + $0x98] sm:$0xff]   ;;  %v965_v33 = vld [vmem:[#allocation7 + $0xa0] sm:$0xff]   ;;  %v966_v34 = vld [vmem:[#allocation7 + $0xa8] sm:$0xff]   ;;  %p1063_p0 = pnand %p1062_p13, %p1056_p10 }
  0x3f   :  { %v729_v35 = vld [vmem:[%s1245_s3 + $0x1] ss:$0 sm:$0xff]  ;;  %v967_v43 = vld [vmem:[#allocation7 + $0xb0] sm:$0xff]   ;;  %v968_v44 = vld [vmem:[#allocation7 + $0xb8] sm:$0xff]  }
  0x40   :  { %832 = vmatmul.mubr.msk.bf16.vlgmr.msra.gmra.mrb[0].mxu0 %vm83_vm1, %v59_v5  ;;  %v969_v45 = vld [vmem:[#allocation7 + $0xc0] sm:$0xff]   ;;  %v970_v46 = vld [vmem:[#allocation7 + $0xc8] sm:$0xff]   ;;  %v971_v47 = vld [vmem:[#allocation7 + $0xd0] sm:$0xff]  }
  0x41   :  { %871 = vmatprep.mubr.msk.bf16.mxu0 %vm1089_vm0, %v1088_v0  ;;  %840 = vmatpush3.bf16.msra.mxu1 %v947_v7  ;;  %v972_v48 = vld [vmem:[#allocation7 + $0xd8] sm:$0xff]   ;;  %v973_v49 = vld [vmem:[#allocation7 + $0xe0] sm:$0xff]   ;;  %v974_v50 = vld [vmem:[#allocation7 + $0xe8] sm:$0xff]  }
  0x42   :  { %841 = vmatprep.subr.bf16.mxu1 %v1088_v0  ;;  %856 = vmatpush3.bf16.msra.mxu0 %v953_v13  ;;  %v739_v51 = vld [vmem:[%s1245_s3 + $0x2] ss:$0 sm:$0xff]  ;;  %v975_v59 = vld [vmem:[#allocation7 + $0xf0] sm:$0xff]   ;;  %v976_v60 = vld [vmem:[#allocation7 + $0xf8] sm:$0xff]  }
  0x43   :  { %857 = vmatprep.subr.bf16.mxu0 %v1088_v0  ;;  %v977_v61 = vld [vmem:[#allocation7 + $0x100] sm:$0xff]   ;;  %v978_v62 = vld [vmem:[#allocation7 + $0x108] sm:$0xff]   ;;  %v979_v63 = vld [vmem:[#allocation7 + $0x110] sm:$0xff]  }
  0x44   :  { %v980_v1 = vld [vmem:[#allocation7 + $0x118] sm:$0xff]   ;;  %v981_v2 = vld [vmem:[#allocation7 + $0x120] sm:$0xff]   ;;  %v982_v3 = vld [vmem:[#allocation7 + $0x128] sm:$0xff]  }
  0x45   :  { %842 = vmatpush3.bf16.msra.mxu1 %v948_v8  ;;  %v749_v4 = vld [vmem:[%s1245_s3 + $0x3] ss:$0 sm:$0xff]  ;;  %v984_v13 = vld [vmem:[#allocation7 + $0x138] sm:$0xff]  }
  0x46   :  { %843 = vmatprep.subr.bf16.mxu1 %v1088_v0  ;;  %858 = vmatpush3.bf16.msra.mxu0 %v954_v14  ;;  %v759_v14 = vld [vmem:[%s1245_s3 + $0x4] ss:$0 sm:$0xff] }
  0x47   :  { %859 = vmatprep.subr.bf16.mxu0 %v1088_v0 }
  0x49   :  { %844 = vmatpush3.bf16.msra.mxu1 %v949_v9 }
  0x4a   :  { %845 = vmatprep.subr.bf16.mxu1 %v1088_v0  ;;  %860 = vmatpush3.bf16.msra.mxu0 %v955_v15 }
  0x4b   :  { %861 = vmatprep.subr.bf16.mxu0 %v1088_v0 }
  0x4d   :  { %846 = vmatpush3.bf16.msra.mxu1 %v950_v10 }
  0x4e   :  { %847 = vmatprep.subr.bf16.mxu1 %v1088_v0  ;;  %862 = vmatpush3.bf16.msra.mxu0 %v956_v16 }
  0x4f   :  { %863 = vmatprep.subr.bf16.mxu0 %v1088_v0 }
  0x51   :  { %848 = vmatpush3.bf16.msra.mxu1 %v951_v11 }
  0x52   :  { %849 = vmatprep.subr.bf16.mxu1 %v1088_v0  ;;  %864 = vmatpush3.bf16.msra.mxu0 %v957_v17 }
  0x53   :  { %865 = vmatprep.subr.bf16.mxu0 %v1088_v0 }
  0x55   :  { %850 = vmatpush3.bf16.msra.mxu1 %v952_v12  ;;  %v983_v12 = vld [vmem:[#allocation7 + $0x130] sm:$0xff]  }
  0x56   :  { %875 = vmatprep.subr.bf16.mxu1 %v1088_v0  ;;  %866 = vmatpush3.bf16.msra.mxu0 %v958_v18 }
  0x57   :  { %867 = vmatprep.subr.bf16.mxu0 %v1088_v0 }
  0x5a   :  { %868 = vmatpush3.bf16.msra.mxu0 %v959_v27 }
  0x5b   :  { %869 = vmatprep.subr.bf16.mxu0 %v1088_v0 }
  0x5e   :  { %870 = vmatpush3.bf16.msra.mxu0 %v960_v28 }
  0x5f   :  { %895 = vmatprep.subr.bf16.mxu0 %v1088_v0 }
 0x113   :  { %v121_v20 = vpop.f32.mrb[0].mxu0 }
 0x114   :  { %v122_v21 = vadd.f32 %v724_v19, %v121_v20  ;;  %v833_v22 = vpop.f32.mrb[1].mxu0 }
 0x115   :  { %v124_v23 = vpop.f32.mrb[2].mxu0  ;;  %v769_v22 = vld [vmem:[%s1245_s3 + $0x5] ss:$0 sm:$0xff] }
 0x116   :  { %v127_v24 = vmax.f32 %v122_v21, 0.0  ;;  %v834_v25 = vpop.f32.mrb[3].mxu0 }
 0x118   :  { %v128_v26 = vpack.c.bf16 %v127_v24, %v127_v24 }
 0x11a   :  { %852 = vmatmul.mubr.bf16.vlgmr.msra.gmra.mrb[0].mxu1 %v128_v26 }
 0x11b   :  { %891 = vmatprep.mubr.msk.bf16.mxu1 %vm1089_vm0, %v1088_v0  ;;  %876 = vmatpush3.bf16.msra.mxu1 %v961_v29 }
 0x11c   :  { %877 = vmatprep.subr.bf16.mxu1 %v1088_v0 }
 0x11f   :  { %878 = vmatpush3.bf16.msra.mxu1 %v962_v30 }
 0x120   :  { %879 = vmatprep.subr.bf16.mxu1 %v1088_v0 }
 0x123   :  { %880 = vmatpush3.bf16.msra.mxu1 %v963_v31 }
 0x124   :  { %881 = vmatprep.subr.bf16.mxu1 %v1088_v0 }
 0x127   :  { %882 = vmatpush3.bf16.msra.mxu1 %v964_v32 }
 0x128   :  { %883 = vmatprep.subr.bf16.mxu1 %v1088_v0 }
 0x12b   :  { %884 = vmatpush3.bf16.msra.mxu1 %v965_v33 }
 0x12c   :  { %885 = vmatprep.subr.bf16.mxu1 %v1088_v0 }
 0x12f   :  { %886 = vmatpush3.bf16.msra.mxu1 %v966_v34 }
 0x130   :  { %887 = vmatprep.subr.bf16.mxu1 %v1088_v0 }
 0x133   :  { %888 = vmatpush3.bf16.msra.mxu1 %v967_v43 }
 0x134   :  { %889 = vmatprep.subr.bf16.mxu1 %v1088_v0 }
 0x137   :  { %890 = vmatpush3.bf16.msra.mxu1 %v968_v44 }
 0x138   :  { %915 = vmatprep.subr.bf16.mxu1 %v1088_v0 }
 0x1ed   :  { %v235_v36 = vpop.f32.mrb[0].mxu1 }
 0x1ee   :  { %v236_v37 = vadd.f32 %v729_v35, %v235_v36  ;;  %v853_v38 = vpop.f32.mrb[1].mxu1 }
 0x1ef   :  { %v238_v39 = vpop.f32.mrb[2].mxu1 }
 0x1f0   :  { %v241_v40 = vmax.f32 %v236_v37, 0.0  ;;  %v854_v41 = vpop.f32.mrb[3].mxu1 }
 0x1f2   :  { %v242_v42 = vpack.c.bf16 %v241_v40, %v241_v40 }
 0x1f4   :  { %872 = vmatmul.mubr.bf16.vlgmr.msra.gmra.mrb[4].mxu0 %v242_v42 }
 0x1f5   :  { %911 = vmatprep.mubr.msk.bf16.mxu0 %vm1089_vm0, %v1088_v0  ;;  %896 = vmatpush3.bf16.msra.mxu0 %v969_v45 }
 0x1f6   :  { %897 = vmatprep.subr.bf16.mxu0 %v1088_v0 }
 0x1f9   :  { %898 = vmatpush3.bf16.msra.mxu0 %v970_v46 }
 0x1fa   :  { %899 = vmatprep.subr.bf16.mxu0 %v1088_v0 }
 0x1fd   :  { %900 = vmatpush3.bf16.msra.mxu0 %v971_v47 }
 0x1fe   :  { %901 = vmatprep.subr.bf16.mxu0 %v1088_v0 }
 0x201   :  { %902 = vmatpush3.bf16.msra.mxu0 %v972_v48 }
 0x202   :  { %903 = vmatprep.subr.bf16.mxu0 %v1088_v0 }
 0x205   :  { %904 = vmatpush3.bf16.msra.mxu0 %v973_v49 }
 0x206   :  { %905 = vmatprep.subr.bf16.mxu0 %v1088_v0 }
 0x209   :  { %906 = vmatpush3.bf16.msra.mxu0 %v974_v50 }
 0x20a   :  { %907 = vmatprep.subr.bf16.mxu0 %v1088_v0 }
 0x20d   :  { %908 = vmatpush3.bf16.msra.mxu0 %v975_v59 }
 0x20e   :  { %909 = vmatprep.subr.bf16.mxu0 %v1088_v0 }
 0x211   :  { %910 = vmatpush3.bf16.msra.mxu0 %v976_v60 }
 0x2c7   :  { %v350_v52 = vpop.f32.mrb[4].mxu0 }
 0x2c8   :  { %v351_v53 = vadd.f32 %v739_v51, %v350_v52  ;;  %v873_v54 = vpop.f32.mrb[5].mxu0 }
 0x2c9   :  { %v353_v55 = vpop.f32.mrb[6].mxu0 }
 0x2ca   :  { %v356_v56 = vmax.f32 %v351_v53, 0.0  ;;  %v874_v57 = vpop.f32.mrb[7].mxu0 }
 0x2cc   :  { %v357_v58 = vpack.c.bf16 %v356_v56, %v356_v56 }
 0x2ce   :  { %892 = vmatmul.mubr.bf16.vlgmr.msra.gmra.mrb[4].mxu1 %v357_v58 }
 0x2cf   :  { %931 = vmatprep.mubr.msk.bf16.mxu1 %vm1089_vm0, %v1088_v0  ;;  %916 = vmatpush3.bf16.msra.mxu1 %v977_v61 }
 0x2d0   :  { %917 = vmatprep.subr.bf16.mxu1 %v1088_v0 }
 0x2d3   :  { %918 = vmatpush3.bf16.msra.mxu1 %v978_v62 }
 0x2d4   :  { %919 = vmatprep.subr.bf16.mxu1 %v1088_v0 }
 0x2d7   :  { %920 = vmatpush3.bf16.msra.mxu1 %v979_v63 }
 0x2d8   :  { %921 = vmatprep.subr.bf16.mxu1 %v1088_v0 }
 0x2db   :  { %922 = vmatpush3.bf16.msra.mxu1 %v980_v1 }
 0x2dc   :  { %923 = vmatprep.subr.bf16.mxu1 %v1088_v0 }
 0x2df   :  { %924 = vmatpush3.bf16.msra.mxu1 %v981_v2 }
 0x2e0   :  { %925 = vmatprep.subr.bf16.mxu1 %v1088_v0 }
 0x2e3   :  { %926 = vmatpush3.bf16.msra.mxu1 %v982_v3 }
 0x2e4   :  { %927 = vmatprep.subr.bf16.mxu1 %v1088_v0 }
 0x2e7   :  { %928 = vmatpush3.bf16.msra.mxu1 %v983_v12 }
 0x2e8   :  { %929 = vmatprep.subr.bf16.mxu1 %v1088_v0 }
 0x2eb   :  { %930 = vmatpush3.bf16.msra.mxu1 %v984_v13 }
 0x3a1   :  { %v465_v5 = vpop.f32.mrb[4].mxu1 }
 0x3a2   :  { %v466_v6 = vadd.f32 %v749_v4, %v465_v5  ;;  %v893_v7 = vpop.f32.mrb[5].mxu1 }
 0x3a3   :  { %v468_v8 = vpop.f32.mrb[6].mxu1 }
 0x3a4   :  { %v471_v9 = vmax.f32 %v466_v6, 0.0  ;;  %v894_v10 = vpop.f32.mrb[7].mxu1 }
 0x3a6   :  { %v472_v11 = vpack.c.bf16 %v471_v9, %v471_v9 }
 0x3a8   :  { %912 = vmatmul.mubr.bf16.vlgmr.msra.gmra.mrb[8].mxu0 %v472_v11 }
 0x47b   :  { %v580_v15 = vpop.f32.mrb[8].mxu0 }
 0x47c   :  { %v581_v16 = vadd.f32 %v759_v14, %v580_v15  ;;  %v913_v17 = vpop.f32.mrb[9].mxu0 }
 0x47d   :  { %v583_v18 = vpop.f32.mrb[10].mxu0 }
 0x47e   :  { %v586_v19 = vmax.f32 %v581_v16, 0.0  ;;  %v914_v20 = vpop.f32.mrb[11].mxu0 }
 0x480   :  { %v587_v21 = vpack.c.bf16 %v586_v19, %v586_v19 }
 0x482   :  { %932 = vmatmul.mubr.bf16.vlgmr.msra.gmra.mrb[8].mxu1 %v587_v21 }
 0x555   :  { %v695_v23 = vpop.f32.mrb[8].mxu1 }
 0x556   :  { %v696_v0 = vadd.f32 %v769_v22, %v695_v23  ;;  %v933_v24 = vpop.f32.mrb[9].mxu1 }
 0x557   :  { %v698_v25 = vpop.f32.mrb[10].mxu1 }
 0x558   :  { %v778_v26 = vmul.f32 -1.442695, %v696_v0  ;;  %v934_v27 = vpop.f32.mrb[11].mxu1 }
 0x55a   :  { %985 = vpow2.f32 %v778_v26 }
 0x564   :  { %v986_v28 = vpop.eup %985 }
 0x565   :  { %v704_v29 = vadd.f32 1.0, %v986_v28 }
 0x567   :  { %987 = vrcp.f32 %v704_v29 }
 0x571   :  { %v988_v30 = vpop.eup %987 }
 0x572   :  { %707 = vst [vmem:[#allocation8] sm:$0xff] %v988_v30 }
 0x573   :  { %1066 = shalt.err (!%p1063_p0)
}
 0x574   :  { %s1067_s1 = scalar_lea.hbm %s1246_s4, 128 }
 0x575   :  { %p1068_p1 = scmp.ne.s32.totalorder %s1246_s4, %s1067_s1  ;;  %p1071_p2 = scmp.lt.u32.totalorder %s1067_s1, %s1246_s4 }
 0x577   :  { %p1073_p3 = pnand %p1071_p2, %p1068_p1 }
 0x579   :  { %1076 = shalt.err (!%p1073_p3)
}
 0x57a   :  { %717 = dma.vmem_to_hbm [thread:$0]  %s715_s11, 128, %s1246_s4, [#allocation4]  }
 0x57b   :  { %1081 = dma.done.wait [#allocation4], 128  }
 0x57c   :  { %1082 = vsyncadd [#allocation4], 4294967168 }
 0x57d   :  { %721 = vsyncpa [#allocation3], 1 }
 0x57e   :  { %722 = vsyncpa [#allocation6], 1 }
 0x57f   :  { %723 = vsyncpa [#allocation4], 1 }

</bundles_post_ra>
